<compile_context>
chip_gen: v6e
topology: v6e:2x2x1
jax: 0.10.0
libtpu: 0.0.40
codegen_flags: <defaults>
</compile_context>

<pallas_src>
import functools

import jax
import jax.numpy as jnp
from jax.experimental import pallas as pl
from jax.experimental.pallas import tpu as pltpu


def _round_up(x, m):
    return ((x + m - 1) // m) * m


def _lstm_fc_kernel(x_ref, wih_t_ref, whh_t_ref, bias_ref, wfc_t_ref, bfc_ref,
                    out_ref, *, seq, batch_tile, hidden_size):
    H = hidden_size
    TB = batch_tile

    # ---- input projection for ALL timesteps of this batch tile ----------------
    # One MXU matmul, bias folded in, hoisted off the serial chain.
    x3 = x_ref[...]                                    # (seq, TB, I)
    x2 = x3.reshape(seq * TB, x3.shape[-1])            # leading-dim merge (layout no-op)
    gates_x = jnp.dot(x2, wih_t_ref[...], preferred_element_type=jnp.float32)
    gates_x = gates_x + bias_ref[...]                  # (seq*TB, 4H); bias broadcast once

    # Loop-invariant recurrent weight (hoisted load).
    # TODO(synk): if the bundle dump shows the MXU RHS push repeated per step,
    # latch it explicitly with pltpu.matmul_push_rhs / matmul_acc_lhs / matmul_pop.
    whh = whh_t_ref[...]                               # (H, 4H)

    # Hoisted column mask: gate block 2 (= g) uses tanh, the rest sigmoid.
    col = jax.lax.broadcasted_iota(jnp.int32, (TB, 4 * H), 1)
    is_g_col = (col >= 2 * H) & (col < 3 * H)

    h = jnp.zeros((TB, H), jnp.float32)
    c = jnp.zeros((TB, H), jnp.float32)

    # Fully unrolled recurrence: seq is small and static (state is ~2 vregs, no
    # spill risk).  For long sequences switch to lax.fori_loop(..., unroll=True).
    for t in range(seq):
        gates = (gates_x[t * TB:(t + 1) * TB, :]       # sublane-aligned (TB % 8 == 0)
                 + jnp.dot(h, whh, preferred_element_type=jnp.float32))
        # Activations on the whole (TB, 4H) vreg, then slice i/f/g/o.
        act = jnp.where(is_g_col, jnp.tanh(gates), jax.nn.sigmoid(gates))
        i_g = act[:, 0 * H:1 * H]
        f_g = act[:, 1 * H:2 * H]
        g_g = act[:, 2 * H:3 * H]
        o_g = act[:, 3 * H:4 * H]
        c = f_g * c + i_g * g_g
        h = o_g * jnp.tanh(c)

    # fc(dropout(ht[-1])) -- dropout is identity in eval mode.  W_fc / b_fc arrive
    # zero-padded to O_pad lanes so the packed output slab is lane-dense.
    y = jnp.dot(h, wfc_t_ref[...], preferred_element_type=jnp.float32) + bfc_ref[...]

    # Single lane-dense (TB, 2H + O_pad) store:  [ h | c | y_pad ].
    out_ref[...] = jnp.concatenate([h, c, y], axis=1)


def mylstm_forward(x, params):
    """x: (seq, B, I) float32.  Returns (out, (ht, ct)) like the torch module."""
    seq, B, I = x.shape
    H = params["whh_t"].shape[0]
    O = params["wfc_t"].shape[1]

    # Batch tiling: one tile at the demo shape; for B > 8 split into two "parallel"
    # tiles so v7x's second TensorCore gets half the (independent) batch rows.
    n_tiles = 2 if B > 8 else 1
    B_pad = _round_up(max(B, 1), 8 * n_tiles)
    TB = B_pad // n_tiles

    # Lane-dense packed output slab:  [ ht(H) | ct(H) | y(O_pad) ],  width % 128 == 0.
    out_w = _round_up(2 * H + O, 128)
    O_pad = out_w - 2 * H

    x_pad = jnp.pad(x, ((0, 0), (0, B_pad - B), (0, 0)))           # (seq, B_pad, I)
    wfc_t = jnp.pad(params["wfc_t"], ((0, 0), (0, O_pad - O)))     # (H, O_pad)
    bfc = jnp.pad(params["bfc"], ((0, 0), (0, O_pad - O)))         # (1, O_pad)

    kernel = functools.partial(_lstm_fc_kernel,
                               seq=seq, batch_tile=TB, hidden_size=H)

    packed = pl.pallas_call(
        kernel,
        out_shape=jax.ShapeDtypeStruct((B_pad, out_w), jnp.float32),
        grid_spec=pltpu.PrefetchScalarGridSpec(
            num_scalar_prefetch=0,
            grid=(n_tiles,),
            in_specs=[
                pl.BlockSpec((seq, TB, I), lambda b: (0, b, 0)),   # x
                pl.BlockSpec((I, 4 * H), lambda b: (0, 0)),        # W_ih^T
                pl.BlockSpec((H, 4 * H), lambda b: (0, 0)),        # W_hh^T
                pl.BlockSpec((1, 4 * H), lambda b: (0, 0)),        # b_ih + b_hh
                pl.BlockSpec((H, O_pad), lambda b: (0, 0)),        # W_fc^T (lane-padded)
                pl.BlockSpec((1, O_pad), lambda b: (0, 0)),        # b_fc   (lane-padded)
            ],
            out_specs=pl.BlockSpec((TB, out_w), lambda b: (b, 0)),
        ),
        compiler_params=pltpu.CompilerParams(
            dimension_semantics=("parallel",)),
    )(x_pad, params["wih_t"], params["whh_t"], params["bias"], wfc_t, bfc)

    # Unpack + strip padding; ht/ct get the (num_layers=1, B, H) torch shape.
    ht = packed[:B, 0:H][None]
    ct = packed[:B, H:2 * H][None]
    y = packed[:B, 2 * H:2 * H + O]
    return y, (ht, ct)


def init_params(key, input_size, hidden_size, output_size):
    """Deterministic synthetic init (PyTorch-style uniform(-1/sqrt(H), 1/sqrt(H)))."""
    k = 1.0 / jnp.sqrt(jnp.float32(hidden_size))
    ks = jax.random.split(key, 6)
    w_ih = jax.random.uniform(ks[0], (4 * hidden_size, input_size), jnp.float32, -k, k)
    w_hh = jax.random.uniform(ks[1], (4 * hidden_size, hidden_size), jnp.float32, -k, k)
    b_ih = jax.random.uniform(ks[2], (4 * hidden_size,), jnp.float32, -k, k)
    b_hh = jax.random.uniform(ks[3], (4 * hidden_size,), jnp.float32, -k, k)
    w_fc = jax.random.uniform(ks[4], (output_size, hidden_size), jnp.float32, -k, k)
    b_fc = jax.random.uniform(ks[5], (output_size,), jnp.float32, -k, k)
    return {
        "wih_t": w_ih.T,                                    # (I, 4H)
        "whh_t": w_hh.T,                                    # (H, 4H)
        "bias": (b_ih + b_hh).reshape(1, 4 * hidden_size),  # (1, 4H)
        "wfc_t": w_fc.T,                                    # (H, O)
        "bfc": b_fc.reshape(1, output_size),                # (1, O)
    }


def mylstm_reference(x, params):
    """Pure-JAX reference of the same forward (for correctness check)."""
    seq, B, I = x.shape
    H = params["whh_t"].shape[0]
    hp = jax.lax.Precision.HIGHEST

    def step(carry, x_t):
        h, c = carry
        gates = (jnp.dot(x_t, params["wih_t"], precision=hp)
                 + jnp.dot(h, params["whh_t"], precision=hp)
                 + params["bias"])
        i = jax.nn.sigmoid(gates[:, 0 * H:1 * H])
        f = jax.nn.sigmoid(gates[:, 1 * H:2 * H])
        g = jnp.tanh(gates[:, 2 * H:3 * H])
        o = jax.nn.sigmoid(gates[:, 3 * H:4 * H])
        c = f * c + i * g
        h = o * jnp.tanh(c)
        return (h, c), None

    (h, c), _ = jax.lax.scan(step, (jnp.zeros((B, H)), jnp.zeros((B, H))), x)
    y = jnp.dot(h, params["wfc_t"], precision=hp) + params["bfc"]
    return y, (h[None], c[None])


if __name__ == "__main__":
    SEQ, BATCH, INPUT, HIDDEN, OUTPUT = 8, 2, 4, 32, 1

    key = jax.random.PRNGKey(0)
    kx, kp = jax.random.split(key)
    x = jax.random.normal(kx, (SEQ, BATCH, INPUT), jnp.float32)
    params = init_params(kp, INPUT, HIDDEN, OUTPUT)

    out, (ht, ct) = mylstm_forward(x, params)
    jax.block_until_ready((out, ht, ct))

    ref_out, (ref_ht, ref_ct) = mylstm_reference(x, params)
    assert out.shape == (BATCH, OUTPUT)
    assert ht.shape == (1, BATCH, HIDDEN) and ct.shape == (1, BATCH, HIDDEN)
    assert jnp.allclose(out, ref_out, atol=1e-4), "fc output mismatch"
    assert jnp.allclose(ht, ref_ht, atol=1e-4), "ht mismatch"
    assert jnp.allclose(ct, ref_ct, atol=1e-4), "ct mismatch"

    print("KERNEL_OK")
</pallas_src>

<mosaic_0001>
module attributes {stable_mosaic.version = 11 : i64} {
  func.func @_lstm_fc_kernel(%arg0: i32, %arg1: memref<8x8x4xf32, #tpu.memory_space<vmem>>, %arg2: memref<4x128xf32, #tpu.memory_space<vmem>>, %arg3: memref<32x128xf32, #tpu.memory_space<vmem>>, %arg4: memref<1x128xf32, #tpu.memory_space<vmem>>, %arg5: memref<32x64xf32, #tpu.memory_space<vmem>>, %arg6: memref<1x64xf32, #tpu.memory_space<vmem>>, %arg7: memref<8x128xf32, #tpu.memory_space<vmem>>) attributes {dimension_semantics = [#tpu.dimension_semantics<parallel>], iteration_bounds = array<i64: 1>, scalar_prefetch = 0 : i64, scratch_operands = 0 : i64, tpu.core_type = #tpu.core_type<tc>, window_params = [{transform_indices = @transform_0, window_bounds = array<i64: 8, 8, 4>}, {pipeline_mode = #tpu.pipeline_mode<synchronous>, transform_indices = @transform_1, window_bounds = array<i64: 4, 128>}, {pipeline_mode = #tpu.pipeline_mode<synchronous>, transform_indices = @transform_2, window_bounds = array<i64: 32, 128>}, {pipeline_mode = #tpu.pipeline_mode<synchronous>, transform_indices = @transform_3, window_bounds = array<i64: 1, 128>}, {pipeline_mode = #tpu.pipeline_mode<synchronous>, transform_indices = @transform_4, window_bounds = array<i64: 32, 64>}, {pipeline_mode = #tpu.pipeline_mode<synchronous>, transform_indices = @transform_5, window_bounds = array<i64: 1, 64>}, {transform_indices = @transform_6, window_bounds = array<i64: 8, 128>}]} {
    %c0 = arith.constant 0 : index
    %c0_0 = arith.constant 0 : index
    %c0_1 = arith.constant 0 : index
    %0 = vector.load %arg1[%c0, %c0_0, %c0_1] : memref<8x8x4xf32, #tpu.memory_space<vmem>>, vector<8x8x4xf32>
    %1 = vector.shape_cast %0 : vector<8x8x4xf32> to vector<64x4xf32>
    %c0_2 = arith.constant 0 : index
    %c0_3 = arith.constant 0 : index
    %2 = vector.load %arg2[%c0_2, %c0_3] : memref<4x128xf32, #tpu.memory_space<vmem>>, vector<4x128xf32>
    %cst = arith.constant dense<0.000000e+00> : vector<64x128xf32>
    %3 = tpu.matmul %1, %2, %cst {dimension_numbers = #tpu.dot_dimension_numbers<[1], [0], [0], [1], [0, 0, 1, 1], [], []>} : vector<64x4xf32>, vector<4x128xf32>, vector<64x128xf32> -> vector<64x128xf32>
    %c0_4 = arith.constant 0 : index
    %c0_5 = arith.constant 0 : index
    %4 = vector.load %arg4[%c0_4, %c0_5] : memref<1x128xf32, #tpu.memory_space<vmem>>, vector<1x128xf32>
    %5 = vector.broadcast %4 : vector<1x128xf32> to vector<64x128xf32>
    %6 = arith.addf %3, %5 : vector<64x128xf32>
    %c0_6 = arith.constant 0 : index
    %c0_7 = arith.constant 0 : index
    %7 = vector.load %arg3[%c0_6, %c0_7] : memref<32x128xf32, #tpu.memory_space<vmem>>, vector<32x128xf32>
    %8 = tpu.iota {dimensions = array<i32: 1>} : vector<8x128xi32>
    %c64_i32 = arith.constant 64 : i32
    %9 = vector.broadcast %c64_i32 : i32 to vector<8x128xi32>
    %10 = arith.cmpi sge, %8, %9 : vector<8x128xi32>
    %c96_i32 = arith.constant 96 : i32
    %11 = vector.broadcast %c96_i32 : i32 to vector<8x128xi32>
    %12 = arith.cmpi slt, %8, %11 : vector<8x128xi32>
    %13 = arith.andi %10, %12 : vector<8x128xi1>
    %cst_8 = arith.constant 0.000000e+00 : f32
    %14 = vector.broadcast %cst_8 : f32 to vector<8x32xf32>
    %cst_9 = arith.constant 0.000000e+00 : f32
    %15 = vector.broadcast %cst_9 : f32 to vector<8x32xf32>
    %16 = vector.extract_strided_slice %6 {offsets = [0, 0], sizes = [8, 128], strides = [1, 1]} : vector<64x128xf32> to vector<8x128xf32>
    %cst_10 = arith.constant dense<0.000000e+00> : vector<8x128xf32>
    %17 = tpu.matmul %14, %7, %cst_10 {dimension_numbers = #tpu.dot_dimension_numbers<[1], [0], [0], [1], [0, 0, 1, 1], [], []>} : vector<8x32xf32>, vector<32x128xf32>, vector<8x128xf32> -> vector<8x128xf32>
    %18 = arith.addf %16, %17 : vector<8x128xf32>
    %19 = math.tanh %18 : vector<8x128xf32>
    %20 = arith.negf %18 : vector<8x128xf32>
    %21 = math.exp %20 : vector<8x128xf32>
    %cst_11 = arith.constant 1.000000e+00 : f32
    %22 = vector.broadcast %cst_11 : f32 to vector<8x128xf32>
    %23 = arith.addf %22, %21 : vector<8x128xf32>
    %24 = arith.divf %22, %23 : vector<8x128xf32>
    %25 = arith.select %13, %19, %24 : vector<8x128xi1>, vector<8x128xf32>
    %26 = vector.extract_strided_slice %25 {offsets = [0, 0], sizes = [8, 32], strides = [1, 1]} : vector<8x128xf32> to vector<8x32xf32>
    %27 = vector.extract_strided_slice %25 {offsets = [0, 32], sizes = [8, 32], strides = [1, 1]} : vector<8x128xf32> to vector<8x32xf32>
    %28 = vector.extract_strided_slice %25 {offsets = [0, 64], sizes = [8, 32], strides = [1, 1]} : vector<8x128xf32> to vector<8x32xf32>
    %29 = vector.extract_strided_slice %25 {offsets = [0, 96], sizes = [8, 32], strides = [1, 1]} : vector<8x128xf32> to vector<8x32xf32>
    %30 = arith.mulf %27, %15 : vector<8x32xf32>
    %31 = arith.mulf %26, %28 : vector<8x32xf32>
    %32 = arith.addf %30, %31 : vector<8x32xf32>
    %33 = math.tanh %32 : vector<8x32xf32>
    %34 = arith.mulf %29, %33 : vector<8x32xf32>
    %35 = vector.extract_strided_slice %6 {offsets = [8, 0], sizes = [8, 128], strides = [1, 1]} : vector<64x128xf32> to vector<8x128xf32>
    %cst_12 = arith.constant dense<0.000000e+00> : vector<8x128xf32>
    %36 = tpu.matmul %34, %7, %cst_12 {dimension_numbers = #tpu.dot_dimension_numbers<[1], [0], [0], [1], [0, 0, 1, 1], [], []>} : vector<8x32xf32>, vector<32x128xf32>, vector<8x128xf32> -> vector<8x128xf32>
    %37 = arith.addf %35, %36 : vector<8x128xf32>
    %38 = math.tanh %37 : vector<8x128xf32>
    %39 = arith.negf %37 : vector<8x128xf32>
    %40 = math.exp %39 : vector<8x128xf32>
    %cst_13 = arith.constant 1.000000e+00 : f32
    %41 = vector.broadcast %cst_13 : f32 to vector<8x128xf32>
    %42 = arith.addf %41, %40 : vector<8x128xf32>
    %43 = arith.divf %41, %42 : vector<8x128xf32>
    %44 = arith.select %13, %38, %43 : vector<8x128xi1>, vector<8x128xf32>
    %45 = vector.extract_strided_slice %44 {offsets = [0, 0], sizes = [8, 32], strides = [1, 1]} : vector<8x128xf32> to vector<8x32xf32>
    %46 = vector.extract_strided_slice %44 {offsets = [0, 32], sizes = [8, 32], strides = [1, 1]} : vector<8x128xf32> to vector<8x32xf32>
    %47 = vector.extract_strided_slice %44 {offsets = [0, 64], sizes = [8, 32], strides = [1, 1]} : vector<8x128xf32> to vector<8x32xf32>
    %48 = vector.extract_strided_slice %44 {offsets = [0, 96], sizes = [8, 32], strides = [1, 1]} : vector<8x128xf32> to vector<8x32xf32>
    %49 = arith.mulf %46, %32 : vector<8x32xf32>
    %50 = arith.mulf %45, %47 : vector<8x32xf32>
    %51 = arith.addf %49, %50 : vector<8x32xf32>
    %52 = math.tanh %51 : vector<8x32xf32>
    %53 = arith.mulf %48, %52 : vector<8x32xf32>
    %54 = vector.extract_strided_slice %6 {offsets = [16, 0], sizes = [8, 128], strides = [1, 1]} : vector<64x128xf32> to vector<8x128xf32>
    %cst_14 = arith.constant dense<0.000000e+00> : vector<8x128xf32>
    %55 = tpu.matmul %53, %7, %cst_14 {dimension_numbers = #tpu.dot_dimension_numbers<[1], [0], [0], [1], [0, 0, 1, 1], [], []>} : vector<8x32xf32>, vector<32x128xf32>, vector<8x128xf32> -> vector<8x128xf32>
    %56 = arith.addf %54, %55 : vector<8x128xf32>
    %57 = math.tanh %56 : vector<8x128xf32>
    %58 = arith.negf %56 : vector<8x128xf32>
    %59 = math.exp %58 : vector<8x128xf32>
    %cst_15 = arith.constant 1.000000e+00 : f32
    %60 = vector.broadcast %cst_15 : f32 to vector<8x128xf32>
    %61 = arith.addf %60, %59 : vector<8x128xf32>
    %62 = arith.divf %60, %61 : vector<8x128xf32>
    %63 = arith.select %13, %57, %62 : vector<8x128xi1>, vector<8x128xf32>
    %64 = vector.extract_strided_slice %63 {offsets = [0, 0], sizes = [8, 32], strides = [1, 1]} : vector<8x128xf32> to vector<8x32xf32>
    %65 = vector.extract_strided_slice %63 {offsets = [0, 32], sizes = [8, 32], strides = [1, 1]} : vector<8x128xf32> to vector<8x32xf32>
    %66 = vector.extract_strided_slice %63 {offsets = [0, 64], sizes = [8, 32], strides = [1, 1]} : vector<8x128xf32> to vector<8x32xf32>
    %67 = vector.extract_strided_slice %63 {offsets = [0, 96], sizes = [8, 32], strides = [1, 1]} : vector<8x128xf32> to vector<8x32xf32>
    %68 = arith.mulf %65, %51 : vector<8x32xf32>
    %69 = arith.mulf %64, %66 : vector<8x32xf32>
    %70 = arith.addf %68, %69 : vector<8x32xf32>
    %71 = math.tanh %70 : vector<8x32xf32>
    %72 = arith.mulf %67, %71 : vector<8x32xf32>
    %73 = vector.extract_strided_slice %6 {offsets = [24, 0], sizes = [8, 128], strides = [1, 1]} : vector<64x128xf32> to vector<8x128xf32>
    %cst_16 = arith.constant dense<0.000000e+00> : vector<8x128xf32>
    %74 = tpu.matmul %72, %7, %cst_16 {dimension_numbers = #tpu.dot_dimension_numbers<[1], [0], [0], [1], [0, 0, 1, 1], [], []>} : vector<8x32xf32>, vector<32x128xf32>, vector<8x128xf32> -> vector<8x128xf32>
    %75 = arith.addf %73, %74 : vector<8x128xf32>
    %76 = math.tanh %75 : vector<8x128xf32>
    %77 = arith.negf %75 : vector<8x128xf32>
    %78 = math.exp %77 : vector<8x128xf32>
    %cst_17 = arith.constant 1.000000e+00 : f32
    %79 = vector.broadcast %cst_17 : f32 to vector<8x128xf32>
    %80 = arith.addf %79, %78 : vector<8x128xf32>
    %81 = arith.divf %79, %80 : vector<8x128xf32>
    %82 = arith.select %13, %76, %81 : vector<8x128xi1>, vector<8x128xf32>
    %83 = vector.extract_strided_slice %82 {offsets = [0, 0], sizes = [8, 32], strides = [1, 1]} : vector<8x128xf32> to vector<8x32xf32>
    %84 = vector.extract_strided_slice %82 {offsets = [0, 32], sizes = [8, 32], strides = [1, 1]} : vector<8x128xf32> to vector<8x32xf32>
    %85 = vector.extract_strided_slice %82 {offsets = [0, 64], sizes = [8, 32], strides = [1, 1]} : vector<8x128xf32> to vector<8x32xf32>
    %86 = vector.extract_strided_slice %82 {offsets = [0, 96], sizes = [8, 32], strides = [1, 1]} : vector<8x128xf32> to vector<8x32xf32>
    %87 = arith.mulf %84, %70 : vector<8x32xf32>
    %88 = arith.mulf %83, %85 : vector<8x32xf32>
    %89 = arith.addf %87, %88 : vector<8x32xf32>
    %90 = math.tanh %89 : vector<8x32xf32>
    %91 = arith.mulf %86, %90 : vector<8x32xf32>
    %92 = vector.extract_strided_slice %6 {offsets = [32, 0], sizes = [8, 128], strides = [1, 1]} : vector<64x128xf32> to vector<8x128xf32>
    %cst_18 = arith.constant dense<0.000000e+00> : vector<8x128xf32>
    %93 = tpu.matmul %91, %7, %cst_18 {dimension_numbers = #tpu.dot_dimension_numbers<[1], [0], [0], [1], [0, 0, 1, 1], [], []>} : vector<8x32xf32>, vector<32x128xf32>, vector<8x128xf32> -> vector<8x128xf32>
    %94 = arith.addf %92, %93 : vector<8x128xf32>
    %95 = math.tanh %94 : vector<8x128xf32>
    %96 = arith.negf %94 : vector<8x128xf32>
    %97 = math.exp %96 : vector<8x128xf32>
    %cst_19 = arith.constant 1.000000e+00 : f32
    %98 = vector.broadcast %cst_19 : f32 to vector<8x128xf32>
    %99 = arith.addf %98, %97 : vector<8x128xf32>
    %100 = arith.divf %98, %99 : vector<8x128xf32>
    %101 = arith.select %13, %95, %100 : vector<8x128xi1>, vector<8x128xf32>
    %102 = vector.extract_strided_slice %101 {offsets = [0, 0], sizes = [8, 32], strides = [1, 1]} : vector<8x128xf32> to vector<8x32xf32>
    %103 = vector.extract_strided_slice %101 {offsets = [0, 32], sizes = [8, 32], strides = [1, 1]} : vector<8x128xf32> to vector<8x32xf32>
    %104 = vector.extract_strided_slice %101 {offsets = [0, 64], sizes = [8, 32], strides = [1, 1]} : vector<8x128xf32> to vector<8x32xf32>
    %105 = vector.extract_strided_slice %101 {offsets = [0, 96], sizes = [8, 32], strides = [1, 1]} : vector<8x128xf32> to vector<8x32xf32>
    %106 = arith.mulf %103, %89 : vector<8x32xf32>
    %107 = arith.mulf %102, %104 : vector<8x32xf32>
    %108 = arith.addf %106, %107 : vector<8x32xf32>
    %109 = math.tanh %108 : vector<8x32xf32>
    %110 = arith.mulf %105, %109 : vector<8x32xf32>
    %111 = vector.extract_strided_slice %6 {offsets = [40, 0], sizes = [8, 128], strides = [1, 1]} : vector<64x128xf32> to vector<8x128xf32>
    %cst_20 = arith.constant dense<0.000000e+00> : vector<8x128xf32>
    %112 = tpu.matmul %110, %7, %cst_20 {dimension_numbers = #tpu.dot_dimension_numbers<[1], [0], [0], [1], [0, 0, 1, 1], [], []>} : vector<8x32xf32>, vector<32x128xf32>, vector<8x128xf32> -> vector<8x128xf32>
    %113 = arith.addf %111, %112 : vector<8x128xf32>
    %114 = math.tanh %113 : vector<8x128xf32>
    %115 = arith.negf %113 : vector<8x128xf32>
    %116 = math.exp %115 : vector<8x128xf32>
    %cst_21 = arith.constant 1.000000e+00 : f32
    %117 = vector.broadcast %cst_21 : f32 to vector<8x128xf32>
    %118 = arith.addf %117, %116 : vector<8x128xf32>
    %119 = arith.divf %117, %118 : vector<8x128xf32>
    %120 = arith.select %13, %114, %119 : vector<8x128xi1>, vector<8x128xf32>
    %121 = vector.extract_strided_slice %120 {offsets = [0, 0], sizes = [8, 32], strides = [1, 1]} : vector<8x128xf32> to vector<8x32xf32>
    %122 = vector.extract_strided_slice %120 {offsets = [0, 32], sizes = [8, 32], strides = [1, 1]} : vector<8x128xf32> to vector<8x32xf32>
    %123 = vector.extract_strided_slice %120 {offsets = [0, 64], sizes = [8, 32], strides = [1, 1]} : vector<8x128xf32> to vector<8x32xf32>
    %124 = vector.extract_strided_slice %120 {offsets = [0, 96], sizes = [8, 32], strides = [1, 1]} : vector<8x128xf32> to vector<8x32xf32>
    %125 = arith.mulf %122, %108 : vector<8x32xf32>
    %126 = arith.mulf %121, %123 : vector<8x32xf32>
    %127 = arith.addf %125, %126 : vector<8x32xf32>
    %128 = math.tanh %127 : vector<8x32xf32>
    %129 = arith.mulf %124, %128 : vector<8x32xf32>
    %130 = vector.extract_strided_slice %6 {offsets = [48, 0], sizes = [8, 128], strides = [1, 1]} : vector<64x128xf32> to vector<8x128xf32>
    %cst_22 = arith.constant dense<0.000000e+00> : vector<8x128xf32>
    %131 = tpu.matmul %129, %7, %cst_22 {dimension_numbers = #tpu.dot_dimension_numbers<[1], [0], [0], [1], [0, 0, 1, 1], [], []>} : vector<8x32xf32>, vector<32x128xf32>, vector<8x128xf32> -> vector<8x128xf32>
    %132 = arith.addf %130, %131 : vector<8x128xf32>
    %133 = math.tanh %132 : vector<8x128xf32>
    %134 = arith.negf %132 : vector<8x128xf32>
    %135 = math.exp %134 : vector<8x128xf32>
    %cst_23 = arith.constant 1.000000e+00 : f32
    %136 = vector.broadcast %cst_23 : f32 to vector<8x128xf32>
    %137 = arith.addf %136, %135 : vector<8x128xf32>
    %138 = arith.divf %136, %137 : vector<8x128xf32>
    %139 = arith.select %13, %133, %138 : vector<8x128xi1>, vector<8x128xf32>
    %140 = vector.extract_strided_slice %139 {offsets = [0, 0], sizes = [8, 32], strides = [1, 1]} : vector<8x128xf32> to vector<8x32xf32>
    %141 = vector.extract_strided_slice %139 {offsets = [0, 32], sizes = [8, 32], strides = [1, 1]} : vector<8x128xf32> to vector<8x32xf32>
    %142 = vector.extract_strided_slice %139 {offsets = [0, 64], sizes = [8, 32], strides = [1, 1]} : vector<8x128xf32> to vector<8x32xf32>
    %143 = vector.extract_strided_slice %139 {offsets = [0, 96], sizes = [8, 32], strides = [1, 1]} : vector<8x128xf32> to vector<8x32xf32>
    %144 = arith.mulf %141, %127 : vector<8x32xf32>
    %145 = arith.mulf %140, %142 : vector<8x32xf32>
    %146 = arith.addf %144, %145 : vector<8x32xf32>
    %147 = math.tanh %146 : vector<8x32xf32>
    %148 = arith.mulf %143, %147 : vector<8x32xf32>
    %149 = vector.extract_strided_slice %6 {offsets = [56, 0], sizes = [8, 128], strides = [1, 1]} : vector<64x128xf32> to vector<8x128xf32>
    %cst_24 = arith.constant dense<0.000000e+00> : vector<8x128xf32>
    %150 = tpu.matmul %148, %7, %cst_24 {dimension_numbers = #tpu.dot_dimension_numbers<[1], [0], [0], [1], [0, 0, 1, 1], [], []>} : vector<8x32xf32>, vector<32x128xf32>, vector<8x128xf32> -> vector<8x128xf32>
    %151 = arith.addf %149, %150 : vector<8x128xf32>
    %152 = math.tanh %151 : vector<8x128xf32>
    %153 = arith.negf %151 : vector<8x128xf32>
    %154 = math.exp %153 : vector<8x128xf32>
    %cst_25 = arith.constant 1.000000e+00 : f32
    %155 = vector.broadcast %cst_25 : f32 to vector<8x128xf32>
    %156 = arith.addf %155, %154 : vector<8x128xf32>
    %157 = arith.divf %155, %156 : vector<8x128xf32>
    %158 = arith.select %13, %152, %157 : vector<8x128xi1>, vector<8x128xf32>
    %159 = vector.extract_strided_slice %158 {offsets = [0, 0], sizes = [8, 32], strides = [1, 1]} : vector<8x128xf32> to vector<8x32xf32>
    %160 = vector.extract_strided_slice %158 {offsets = [0, 32], sizes = [8, 32], strides = [1, 1]} : vector<8x128xf32> to vector<8x32xf32>
    %161 = vector.extract_strided_slice %158 {offsets = [0, 64], sizes = [8, 32], strides = [1, 1]} : vector<8x128xf32> to vector<8x32xf32>
    %162 = vector.extract_strided_slice %158 {offsets = [0, 96], sizes = [8, 32], strides = [1, 1]} : vector<8x128xf32> to vector<8x32xf32>
    %163 = arith.mulf %160, %146 : vector<8x32xf32>
    %164 = arith.mulf %159, %161 : vector<8x32xf32>
    %165 = arith.addf %163, %164 : vector<8x32xf32>
    %166 = math.tanh %165 : vector<8x32xf32>
    %167 = arith.mulf %162, %166 : vector<8x32xf32>
    %c0_26 = arith.constant 0 : index
    %c0_27 = arith.constant 0 : index
    %168 = vector.load %arg5[%c0_26, %c0_27] : memref<32x64xf32, #tpu.memory_space<vmem>>, vector<32x64xf32>
    %cst_28 = arith.constant dense<0.000000e+00> : vector<8x64xf32>
    %169 = tpu.matmul %167, %168, %cst_28 {dimension_numbers = #tpu.dot_dimension_numbers<[1], [0], [0], [1], [0, 0, 1, 1], [], []>} : vector<8x32xf32>, vector<32x64xf32>, vector<8x64xf32> -> vector<8x64xf32>
    %c0_29 = arith.constant 0 : index
    %c0_30 = arith.constant 0 : index
    %170 = vector.load %arg6[%c0_29, %c0_30] : memref<1x64xf32, #tpu.memory_space<vmem>>, vector<1x64xf32>
    %171 = vector.broadcast %170 : vector<1x64xf32> to vector<8x64xf32>
    %172 = arith.addf %169, %171 : vector<8x64xf32>
    %173 = tpu.concatenate %167, %165, %172 in 1 : vector<8x32xf32>, vector<8x32xf32>, vector<8x64xf32> -> vector<8x128xf32>
    %c0_31 = arith.constant 0 : index
    %c0_32 = arith.constant 0 : index
    %174 = vector.load %arg7[%c0_31, %c0_32] : memref<8x128xf32, #tpu.memory_space<vmem>>, vector<8x128xf32>
    tpu.vector_store %arg7[%c0_31, %c0_32], %173 {strides = array<i32>} : memref<8x128xf32, #tpu.memory_space<vmem>>, vector<8x128xf32>,
    return
  }
  func.func @transform_0(%arg0: i32) -> (i32, i32, i32) {
    %c0_i32 = arith.constant 0 : i32
    %c0_i32_0 = arith.constant 0 : i32
    %c0_i32_1 = arith.constant 0 : i32
    return %c0_i32, %arg0, %c0_i32_0 : i32, i32, i32
  }
  func.func @transform_1(%arg0: i32) -> (i32, i32) {
    %c0_i32 = arith.constant 0 : i32
    %c0_i32_0 = arith.constant 0 : i32
    %c0_i32_1 = arith.constant 0 : i32
    return %c0_i32, %c0_i32_0 : i32, i32
  }
  func.func @transform_2(%arg0: i32) -> (i32, i32) {
    %c0_i32 = arith.constant 0 : i32
    %c0_i32_0 = arith.constant 0 : i32
    %c0_i32_1 = arith.constant 0 : i32
    return %c0_i32, %c0_i32_0 : i32, i32
  }
  func.func @transform_3(%arg0: i32) -> (i32, i32) {
    %c0_i32 = arith.constant 0 : i32
    %c0_i32_0 = arith.constant 0 : i32
    %c0_i32_1 = arith.constant 0 : i32
    return %c0_i32, %c0_i32_0 : i32, i32
  }
  func.func @transform_4(%arg0: i32) -> (i32, i32) {
    %c0_i32 = arith.constant 0 : i32
    %c0_i32_0 = arith.constant 0 : i32
    %c0_i32_1 = arith.constant 0 : i32
    return %c0_i32, %c0_i32_0 : i32, i32
  }
  func.func @transform_5(%arg0: i32) -> (i32, i32) {
    %c0_i32 = arith.constant 0 : i32
    %c0_i32_0 = arith.constant 0 : i32
    %c0_i32_1 = arith.constant 0 : i32
    return %c0_i32, %c0_i32_0 : i32, i32
  }
  func.func @transform_6(%arg0: i32) -> (i32, i32) {
    %c0_i32 = arith.constant 0 : i32
    %c0_i32_0 = arith.constant 0 : i32
    return %arg0, %c0_i32 : i32, i32
  }
}

</mosaic_0001>

<bundles_post_ra>
// kernel: tpu_custom_call.1
= control target key start
LH: loop header
LB: loop body
LE: loop exit
PB: predicated region body
PF: predicated region fallthrough
CT: control target
= control target key end

     0   :  { %vm65_vm0 = vcmask 1043456   ;;  %vm40_vm1 = vcmask 31744   ;;  %v1384_v2 = vmov 0.0   ;;  %s1671_s0 = inlined_call_operand.vmem [shape: f32[8,8,4], index: 0, kind: input, shape index: {}]   ;;  %s1672_s1 = inlined_call_operand.vmem [shape: f32[4,128], index: 1, kind: input, shape index: {}]   ;;  %s1673_s2 = inlined_call_operand.vmem [shape: f32[32,128], index: 2, kind: input, shape index: {}]   ;;  %s1674_s3 = inlined_call_operand.vmem [shape: f32[1,128], index: 3, kind: input, shape index: {}]   ;;  %s1675_s4 = inlined_call_operand.vmem [shape: f32[32,64], index: 4, kind: input, shape index: {}]   ;;  %s1676_s5 = inlined_call_operand.vmem [shape: f32[1,64], index: 5, kind: input, shape index: {}]   ;;  %s1677_s6 = inlined_call_operand.hbm [shape: f32[8,128], index: 6, kind: output, shape index: {}]  }
   0x1   :  { %v32_v0 = vld [vmem:[%s1672_s1] sm:$0xf]  ;;  %1194 = vmatprep.subr.mxu1 %v1384_v2  ;;  %v1434_v3 = vld [vmem:[%s1673_s2 + $0x18] sm:$0xff]  ;;  %v25_v4 = vld [vmem:[%s1671_s0 + $0x8] sm:$0xff] }
   0x2   :  { %v24_v1 = vld [vmem:[%s1671_s0] sm:$0xff]  ;;  %1180 = vmatprep.subr.msk.mxu0 %vm65_vm0, %v32_v0  ;;  %v1443_v5 = vld [vmem:[%s1673_s2 + $0x10] sm:$0xff] }
   0x3   :  { %1181 = vmatpush3.msk.msra.mxu0 %vm65_vm0, %v32_v0  ;;  %1182 = vmatprep.mubr.msk.f32.mxu0 %vm40_vm1, %v24_v1 }
   0x4   :  { %11 = vsyncpa [#allocation3], 0  ;;  %1195 = vmatpush3.msra.mxu1 %v1434_v3  ;;  %1183 = vmatmul.mubr.msk.f32.vlgmr.msra.gmra.mxu0 %vm40_vm1, %v25_v4  ;;  %v1451_v6 = vld [vmem:[%s1673_s2 + $0x8] sm:$0xff]  ;;  %vm1385_vm2 = vmmov 0   ;;  %v1461_v7 = vld [vmem:[%s1673_s2] sm:$0xff]  ;;  %v178_v18 = vlaneseq  ;;  %s1387_s11 = smov 32  }
   0x5   :  { %1196 = vmatprep.subr.mxu1 %v1384_v2  ;;  %1202 = vmatprep.mubr.msk.f32.mxu1 %vm1385_vm2, %v1384_v2  ;;  %v1489_v9 = vld [vmem:[%s1674_s3] ss:$0 sm:$0xff]  ;;  %s1386_s3 = smov 64   ;;  %vm183_vm6 = vcmask 261120   ;;  %v26_v48 = vld [vmem:[%s1671_s0 + $0x10] sm:$0xff]  ;;  %v27_v49 = vld [vmem:[%s1671_s0 + $0x18] sm:$0xff] }
   0x6   :  { %1197 = vmatpush3.msra.mxu1 %v1443_v5  ;;  %1216 = vmatprep.subr.mxu0 %v1384_v2  ;;  %v179_v19 = vand.u32 127, %v178_v18  ;;  %v28_v50 = vld [vmem:[%s1671_s0 + $0x20] sm:$0xff]  ;;  %v29_v51 = vld [vmem:[%s1671_s0 + $0x28] sm:$0xff]  ;;  %v30_v52 = vld [vmem:[%s1671_s0 + $0x30] sm:$0xff]  ;;  %vm1082_vm7 = vcmask 523264  }
   0x7   :  { %1198 = vmatprep.subr.mxu1 %v1384_v2  ;;  %1217 = vmatpush3.msra.mxu0 %v1434_v3  ;;  %v31_v53 = vld [vmem:[%s1671_s0 + $0x38] sm:$0xff]  ;;  %v991_v20 = vld [vmem:[%s1675_s4 + $0x8] sm:$0xff] }
   0x8   :  { %1199 = vmatpush3.msra.mxu1 %v1451_v6  ;;  %1218 = vmatprep.subr.mxu0 %v1384_v2  ;;  %vm180_vm3 = vcmp.ge.s32.totalorder %v179_v19, 64  ;;  %vm181_vm4 = vcmp.lt.s32.totalorder %v179_v19, 96 }
   0x9   :  { %1200 = vmatprep.subr.mxu1 %v1384_v2  ;;  %1219 = vmatpush3.msra.mxu0 %v1443_v5  ;;  %vm1492_vm5 = vmand %vm180_vm3, %vm181_vm4 }
   0xa   :  { %1201 = vmatpush3.msra.mxu1 %v1461_v7  ;;  %1220 = vmatprep.subr.mxu0 %v1384_v2 }
   0xb   :  { %1203 = vmatmul.mubr.f32.vlgmr.msra.gmra.mxu1 %v1384_v2  ;;  %1205 = vmatprep.subr.mxu1 %v1384_v2 }
   0xc   :  { %1206 = vmatpush3.msra.mxu1 %v1434_v3  ;;  %1213 = vmatprep.mubr.msk.f32.mxu1 %vm1385_vm2, %v1384_v2 }
   0xd   :  { %1207 = vmatprep.subr.mxu1 %v1384_v2  ;;  %1221 = vmatpush3.msra.mxu0 %v1451_v6 }
   0xe   :  { %1208 = vmatpush3.msra.mxu1 %v1443_v5  ;;  %1222 = vmatprep.subr.mxu0 %v1384_v2 }
   0xf   :  { %1209 = vmatprep.subr.mxu1 %v1384_v2  ;;  %1223 = vmatpush3.msra.mxu0 %v1461_v7 }
  0x10   :  { %1210 = vmatpush3.msra.mxu1 %v1451_v6  ;;  %1238 = vmatprep.subr.mxu0 %v1384_v2 }
  0x11   :  { %1211 = vmatprep.subr.mxu1 %v1384_v2  ;;  %1185 = vmatprep.mubr.msk.f32.mxu0 %vm40_vm1, %v26_v48 }
  0x12   :  { %1212 = vmatpush3.msra.mxu1 %v1461_v7  ;;  %1186 = vmatmul.mubr.msk.f32.gmra.mxu0 %vm40_vm1, %v27_v49 }
  0x13   :  { %1227 = vmatprep.subr.mxu1 %v1384_v2  ;;  %1188 = vmatprep.mubr.msk.f32.mxu0 %vm40_vm1, %v28_v50 }
  0x16   :  { %1189 = vmatmul.mubr.msk.f32.gmra.mxu0 %vm40_vm1, %v29_v51 }
  0x17   :  { %1191 = vmatprep.mubr.msk.f32.mxu0 %vm40_vm1, %v30_v52 }
  0x1a   :  { %1192 = vmatmul.mubr.msk.f32.gmra.mxu0 %vm40_vm1, %v31_v53 }
  0x1b   :  { %1224 = vmatprep.mubr.msk.f32.mxu0 %vm1385_vm2, %v1384_v2 }
  0xc4   :  { %v1184_v8 = vpop.f32.mrf.mxu0 }
  0xc5   :  { %v141_v33 = vadd.f32 %v1184_v8, %v1489_v9 }
  0xc6   :  { %v135_v10 = vpop.f32.mrf.mxu0 }
  0xc7   :  { %v136_v11 = vadd.f32 %v1489_v9, %v135_v10 }
  0xcb   :  { %v253_v12 = vpop.f32.mrf.mxu1 }
  0xcc   :  { %v257_v13 = vadd.f32 %v253_v12, %v136_v11 }
  0xcd   :  { %v1204_v14 = vpop.f32.mrf.mxu1 }
  0xce   :  { %v1109_v15 = vmul.f32 -1.442695, %v257_v13 }
  0xd0   :  { %1298 = vpow2.f32 %v1109_v15 }
  0xd1   :  { %1300 = vtanh.f32 %v257_v13 }
  0xd2   :  { %v1187_v58 = vpop.f32.mrf.mxu0 }
  0xd4   :  { %v145_v59 = vpop.f32.mrf.mxu0 }
  0xd5   :  { %v146_v0 = vadd.f32 %v1489_v9, %v145_v59 }
  0xd6   :  { %v1557_v60 = vpop.f32.mrf.mxu0 }
  0xd8   :  { %v1559_v61 = vpop.f32.mrf.mxu0 }
  0xda   :  { %v1561_v62 = vpop.f32.mrf.mxu0 }
  0xdc   :  { %v1563_v63 = vpop.f32.mrf.mxu0 }
  0xdd   :  { %v1299_v16 = vpop.eup %1298 }
  0xde   :  { %v262_v17 = vadd.f32 1.0, %v1299_v16  ;;  %v1301_v21 = vpop.eup %1300 }
  0xe0   :  { %1302 = vrcp.f32 %v262_v17 }
  0xed   :  { %v1303_v22 = vpop.eup %1302 }
  0xee   :  { %v265_v23 = vsel %vm1492_vm5, %v1301_v21, %v1303_v22 }
  0xef   :  { %268 = vrot.lane.b32.xlu0 %v265_v23, %s1386_s3  ;;  %v266_v26 = vmul.f32 0.0, %v265_v23 }
 0x161   :  { %v269_v24 = vpop.permute.xlu0 %268 }
 0x162   :  { %v271_v25 = vmul.f32 %v269_v24, %v265_v23 }
 0x164   :  { %273 = vrot.lane.b32.xlu0 %v271_v25, %s1387_s11 }
 0x1d6   :  { %v274_v27 = vpop.permute.xlu0 %273 }
 0x1d7   :  { %v276_v28 = vadd.f32 %v274_v27, %v266_v26  ;;  %v151_v26 = vadd.f32 %v1187_v58, %v1489_v9 }
 0x1d9   :  { %1304 = vtanh.f32 %v276_v28 }
 0x1e6   :  { %v1305_v29 = vpop.eup %1304 }
 0x1e7   :  { %279 = vrot.lane.b32.xlu1 %v1305_v29, %s1386_s3 }
 0x259   :  { %v280_v30 = vpop.permute.xlu1 %279 }
 0x25a   :  { %v282_v31 = vmul.f32 %v280_v30, %v265_v23 }
 0x25c   :  { %284 = vrot.lane.b32.xlu1 %v282_v31, %s1387_s11 }
 0x2ce   :  { %v285_v32 = vpop.permute.xlu1 %284 }
 0x2cf   :  { %1214 = vmatmul.mubr.msk.f32.vlgmr.msra.gmra.mxu1 %vm183_vm6, %v285_v32 }
 0x2d0   :  { %1228 = vmatpush3.msra.mxu1 %v1434_v3  ;;  %1235 = vmatprep.mubr.msk.f32.mxu1 %vm1385_vm2, %v1384_v2 }
 0x2d1   :  { %1229 = vmatprep.subr.mxu1 %v1384_v2 }
 0x2d2   :  { %1230 = vmatpush3.msra.mxu1 %v1443_v5 }
 0x2d3   :  { %1231 = vmatprep.subr.mxu1 %v1384_v2 }
 0x2d4   :  { %1232 = vmatpush3.msra.mxu1 %v1451_v6 }
 0x2d5   :  { %1233 = vmatprep.subr.mxu1 %v1384_v2 }
 0x2d6   :  { %1234 = vmatpush3.msra.mxu1 %v1461_v7 }
 0x2d7   :  { %1249 = vmatprep.subr.mxu1 %v1384_v2 }
 0x38f   :  { %v354_v34 = vpop.f32.mrf.mxu1 }
 0x390   :  { %v358_v35 = vadd.f32 %v354_v34, %v141_v33 }
 0x391   :  { %v1215_v36 = vpop.f32.mrf.mxu1 }
 0x392   :  { %v1111_v37 = vmul.f32 -1.442695, %v358_v35 }
 0x394   :  { %1306 = vpow2.f32 %v1111_v37 }
 0x395   :  { %1308 = vtanh.f32 %v358_v35 }
 0x3a1   :  { %v1307_v38 = vpop.eup %1306 }
 0x3a2   :  { %v363_v39 = vadd.f32 1.0, %v1307_v38  ;;  %v1309_v40 = vpop.eup %1308 }
 0x3a4   :  { %1310 = vrcp.f32 %v363_v39 }
 0x3b1   :  { %v1311_v41 = vpop.eup %1310 }
 0x3b2   :  { %v366_v42 = vsel %vm1492_vm5, %v1309_v40, %v1311_v41 }
 0x3b3   :  { %369 = vrot.lane.b32.xlu0 %v366_v42, %s1386_s3  ;;  %v367_v45 = vmul.f32 %v366_v42, %v276_v28 }
 0x425   :  { %v370_v43 = vpop.permute.xlu0 %369 }
 0x426   :  { %v372_v44 = vmul.f32 %v370_v43, %v366_v42 }
 0x428   :  { %374 = vrot.lane.b32.xlu1 %v372_v44, %s1387_s11 }
 0x49a   :  { %v375_v46 = vpop.permute.xlu1 %374 }
 0x49b   :  { %v377_v47 = vadd.f32 %v375_v46, %v367_v45  ;;  %v156_v45 = vadd.f32 %v1489_v9, %v1559_v61 }
 0x49d   :  { %1312 = vtanh.f32 %v377_v47 }
 0x4aa   :  { %v1313_v54 = vpop.eup %1312 }
 0x4ab   :  { %380 = vrot.lane.b32.xlu0 %v1313_v54, %s1386_s3 }
 0x51d   :  { %v381_v55 = vpop.permute.xlu0 %380 }
 0x51e   :  { %v383_v56 = vmul.f32 %v381_v55, %v366_v42 }
 0x520   :  { %385 = vrot.lane.b32.xlu1 %v383_v56, %s1387_s11 }
 0x592   :  { %v386_v57 = vpop.permute.xlu1 %385 }
 0x593   :  { %1225 = vmatmul.mubr.msk.f32.vlgmr.msra.gmra.mxu0 %vm183_vm6, %v386_v57 }
 0x594   :  { %1239 = vmatpush3.msra.mxu0 %v1434_v3  ;;  %1246 = vmatprep.mubr.msk.f32.mxu0 %vm1385_vm2, %v1384_v2 }
 0x595   :  { %1240 = vmatprep.subr.mxu0 %v1384_v2 }
 0x596   :  { %1241 = vmatpush3.msra.mxu0 %v1443_v5 }
 0x597   :  { %1242 = vmatprep.subr.mxu0 %v1384_v2 }
 0x598   :  { %1243 = vmatpush3.msra.mxu0 %v1451_v6 }
 0x599   :  { %1244 = vmatprep.subr.mxu0 %v1384_v2 }
 0x59a   :  { %1245 = vmatpush3.msra.mxu0 %v1461_v7 }
 0x59b   :  { %1260 = vmatprep.subr.mxu0 %v1384_v2 }
 0x653   :  { %v455_v1 = vpop.f32.mrf.mxu0 }
 0x654   :  { %v459_v4 = vadd.f32 %v455_v1, %v146_v0 }
 0x655   :  { %v1226_v8 = vpop.f32.mrf.mxu0 }
 0x656   :  { %v1113_v10 = vmul.f32 -1.442695, %v459_v4  ;;  %v161_v8 = vadd.f32 %v1557_v60, %v1489_v9 }
 0x658   :  { %1314 = vpow2.f32 %v1113_v10 }
 0x659   :  { %1316 = vtanh.f32 %v459_v4 }
 0x665   :  { %v1315_v11 = vpop.eup %1314 }
 0x666   :  { %v464_v12 = vadd.f32 1.0, %v1315_v11  ;;  %v1317_v13 = vpop.eup %1316 }
 0x668   :  { %1318 = vrcp.f32 %v464_v12 }
 0x675   :  { %v1319_v14 = vpop.eup %1318 }
 0x676   :  { %v467_v15 = vsel %vm1492_vm5, %v1317_v13, %v1319_v14 }
 0x677   :  { %470 = vrot.lane.b32.xlu0 %v467_v15, %s1386_s3  ;;  %v468_v18 = vmul.f32 %v467_v15, %v377_v47 }
 0x6e9   :  { %v471_v16 = vpop.permute.xlu0 %470 }
 0x6ea   :  { %v473_v17 = vmul.f32 %v471_v16, %v467_v15 }
 0x6ec   :  { %475 = vrot.lane.b32.xlu1 %v473_v17, %s1387_s11 }
 0x75e   :  { %v476_v19 = vpop.permute.xlu1 %475 }
 0x75f   :  { %v478_v21 = vadd.f32 %v476_v19, %v468_v18 }
 0x761   :  { %1320 = vtanh.f32 %v478_v21 }
 0x76e   :  { %v1321_v22 = vpop.eup %1320 }
 0x76f   :  { %481 = vrot.lane.b32.xlu0 %v1321_v22, %s1386_s3 }
 0x7e1   :  { %v482_v23 = vpop.permute.xlu0 %481 }
 0x7e2   :  { %v484_v24 = vmul.f32 %v482_v23, %v467_v15 }
 0x7e4   :  { %486 = vrot.lane.b32.xlu1 %v484_v24, %s1387_s11  ;;  %v166_v24 = vadd.f32 %v1489_v9, %v1563_v63 }
 0x856   :  { %v487_v25 = vpop.permute.xlu1 %486 }
 0x857   :  { %1236 = vmatmul.mubr.msk.f32.vlgmr.msra.gmra.mxu1 %vm183_vm6, %v487_v25 }
 0x858   :  { %1250 = vmatpush3.msra.mxu1 %v1434_v3  ;;  %1257 = vmatprep.mubr.msk.f32.mxu1 %vm1385_vm2, %v1384_v2 }
 0x859   :  { %1251 = vmatprep.subr.mxu1 %v1384_v2 }
 0x85a   :  { %1252 = vmatpush3.msra.mxu1 %v1443_v5 }
 0x85b   :  { %1253 = vmatprep.subr.mxu1 %v1384_v2 }
 0x85c   :  { %1254 = vmatpush3.msra.mxu1 %v1451_v6 }
 0x85d   :  { %1255 = vmatprep.subr.mxu1 %v1384_v2 }
 0x85e   :  { %1256 = vmatpush3.msra.mxu1 %v1461_v7 }
 0x85f   :  { %1271 = vmatprep.subr.mxu1 %v1384_v2 }
 0x917   :  { %v556_v27 = vpop.f32.mrf.mxu1 }
 0x918   :  { %v560_v28 = vadd.f32 %v556_v27, %v151_v26 }
 0x919   :  { %v1237_v29 = vpop.f32.mrf.mxu1 }
 0x91a   :  { %v1115_v30 = vmul.f32 -1.442695, %v560_v28 }
 0x91c   :  { %1322 = vpow2.f32 %v1115_v30 }
 0x91d   :  { %1324 = vtanh.f32 %v560_v28 }
 0x929   :  { %v1323_v31 = vpop.eup %1322 }
 0x92a   :  { %v565_v32 = vadd.f32 1.0, %v1323_v31  ;;  %v1325_v33 = vpop.eup %1324 }
 0x92c   :  { %1326 = vrcp.f32 %v565_v32 }
 0x939   :  { %v1327_v34 = vpop.eup %1326 }
 0x93a   :  { %v568_v35 = vsel %vm1492_vm5, %v1325_v33, %v1327_v34 }
 0x93b   :  { %571 = vrot.lane.b32.xlu0 %v568_v35, %s1386_s3  ;;  %v569_v38 = vmul.f32 %v568_v35, %v478_v21 }
 0x9ad   :  { %v572_v36 = vpop.permute.xlu0 %571 }
 0x9ae   :  { %v574_v37 = vmul.f32 %v572_v36, %v568_v35 }
 0x9b0   :  { %576 = vrot.lane.b32.xlu1 %v574_v37, %s1387_s11 }
 0xa22   :  { %v577_v39 = vpop.permute.xlu1 %576 }
 0xa23   :  { %v579_v40 = vadd.f32 %v577_v39, %v569_v38 }
 0xa25   :  { %1328 = vtanh.f32 %v579_v40 }
 0xa32   :  { %v1329_v41 = vpop.eup %1328 }
 0xa33   :  { %582 = vrot.lane.b32.xlu0 %v1329_v41, %s1386_s3 }
 0xaa5   :  { %v583_v42 = vpop.permute.xlu0 %582 }
 0xaa6   :  { %v585_v43 = vmul.f32 %v583_v42, %v568_v35  ;;  %v171_v42 = vadd.f32 %v1561_v62, %v1489_v9 }
 0xaa8   :  { %587 = vrot.lane.b32.xlu1 %v585_v43, %s1387_s11 }
 0xb1a   :  { %v588_v44 = vpop.permute.xlu1 %587 }
 0xb1b   :  { %1247 = vmatmul.mubr.msk.f32.vlgmr.msra.gmra.mxu0 %vm183_vm6, %v588_v44 }
 0xb1c   :  { %1261 = vmatpush3.msra.mxu0 %v1434_v3  ;;  %1268 = vmatprep.mubr.msk.f32.mxu0 %vm1385_vm2, %v1384_v2 }
 0xb1d   :  { %1262 = vmatprep.subr.mxu0 %v1384_v2 }
 0xb1e   :  { %1263 = vmatpush3.msra.mxu0 %v1443_v5 }
 0xb1f   :  { %1264 = vmatprep.subr.mxu0 %v1384_v2 }
 0xb20   :  { %1265 = vmatpush3.msra.mxu0 %v1451_v6 }
 0xb21   :  { %1266 = vmatprep.subr.mxu0 %v1384_v2 }
 0xb22   :  { %1267 = vmatpush3.msra.mxu0 %v1461_v7 }
 0xb23   :  { %1282 = vmatprep.subr.mxu0 %v1384_v2 }
 0xbdb   :  { %v657_v46 = vpop.f32.mrf.mxu0 }
 0xbdc   :  { %v661_v47 = vadd.f32 %v657_v46, %v156_v45 }
 0xbdd   :  { %v1248_v48 = vpop.f32.mrf.mxu0 }
 0xbde   :  { %v1117_v49 = vmul.f32 -1.442695, %v661_v47 }
 0xbe0   :  { %1330 = vpow2.f32 %v1117_v49 }
 0xbe1   :  { %1332 = vtanh.f32 %v661_v47 }
 0xbed   :  { %v1331_v50 = vpop.eup %1330 }
 0xbee   :  { %v666_v51 = vadd.f32 1.0, %v1331_v50  ;;  %v1333_v52 = vpop.eup %1332 }
 0xbf0   :  { %1334 = vrcp.f32 %v666_v51 }
 0xbfd   :  { %v1335_v53 = vpop.eup %1334 }
 0xbfe   :  { %v669_v54 = vsel %vm1492_vm5, %v1333_v52, %v1335_v53 }
 0xbff   :  { %672 = vrot.lane.b32.xlu0 %v669_v54, %s1386_s3  ;;  %v670_v57 = vmul.f32 %v669_v54, %v579_v40 }
 0xc71   :  { %v673_v55 = vpop.permute.xlu0 %672 }
 0xc72   :  { %v675_v56 = vmul.f32 %v673_v55, %v669_v54  ;;  %v993_v55 = vld [vmem:[%s1675_s4 + $0x18] sm:$0xff] }
 0xc74   :  { %677 = vrot.lane.b32.xlu1 %v675_v56, %s1387_s11  ;;  %v992_v56 = vld [vmem:[%s1675_s4 + $0x10] sm:$0xff] }
 0xce6   :  { %v678_v58 = vpop.permute.xlu1 %677 }
 0xce7   :  { %v680_v59 = vadd.f32 %v678_v58, %v670_v57  ;;  %v990_v57 = vld [vmem:[%s1675_s4] sm:$0xff]  ;;  %s1388_s4 = smov [#allocation2]  }
 0xce8   :  { %s1091_s8 = sshll.u32 %s1388_s4, 4  ;;  %s1092_s8 = int_to_ptr.vmem [resolvable:$true] %s1091_s8 }
 0xce9   :  { %1336 = vtanh.f32 %v680_v59  ;;  %s1362_s9 = scalar_lea.vmem %s1092_s8, 128  ;;  %p1367_p1 = scmp.lt.s32.totalorder %s1092_s8, %s1092_s8 }
 0xcea   :  { %p1363_p0 = scmp.ne.s32.totalorder %s1092_s8, %s1362_s9  ;;  %p1368_p2 = scmp.lt.s32.totalorder %s1362_s9, %s1362_s9 }
 0xcec   :  { %p1369_p3 = por %p1368_p2, %p1367_p1 }
 0xcee   :  { %p1370_p4 = pnand %p1369_p3, %p1363_p0 }
 0xcf6   :  { %v1337_v61 = vpop.eup %1336 }
 0xcf7   :  { %683 = vrot.lane.b32.xlu0 %v1337_v61, %s1386_s3 }
 0xd69   :  { %v684_v0 = vpop.permute.xlu0 %683 }
 0xd6a   :  { %v686_v1 = vmul.f32 %v684_v0, %v669_v54 }
 0xd6c   :  { %688 = vrot.lane.b32.xlu1 %v686_v1, %s1387_s11  ;;  %v1124_v1 = vld [vmem:[%s1676_s5] ss:$0 sm:$0xff] }
 0xdde   :  { %v689_v4 = vpop.permute.xlu1 %688 }
 0xddf   :  { %1258 = vmatmul.mubr.msk.f32.vlgmr.msra.gmra.mxu1 %vm183_vm6, %v689_v4 }
 0xde0   :  { %1272 = vmatpush3.msra.mxu1 %v1434_v3  ;;  %1279 = vmatprep.mubr.msk.f32.mxu1 %vm1385_vm2, %v1384_v2 }
 0xde1   :  { %1273 = vmatprep.subr.mxu1 %v1384_v2 }
 0xde2   :  { %1274 = vmatpush3.msra.mxu1 %v1443_v5 }
 0xde3   :  { %1275 = vmatprep.subr.mxu1 %v1384_v2 }
 0xde4   :  { %1276 = vmatpush3.msra.mxu1 %v1451_v6 }
 0xde5   :  { %1277 = vmatprep.subr.mxu1 %v1384_v2 }
 0xde6   :  { %1278 = vmatpush3.msra.mxu1 %v1461_v7 }
 0xe9f   :  { %v758_v10 = vpop.f32.mrf.mxu1 }
 0xea0   :  { %v762_v3 = vadd.f32 %v758_v10, %v161_v8 }
 0xea1   :  { %v1259_v11 = vpop.f32.mrf.mxu1 }
 0xea2   :  { %v1119_v12 = vmul.f32 -1.442695, %v762_v3 }
 0xea4   :  { %1338 = vpow2.f32 %v1119_v12 }
 0xea5   :  { %1340 = vtanh.f32 %v762_v3 }
 0xeb1   :  { %v1339_v13 = vpop.eup %1338 }
 0xeb2   :  { %v767_v14 = vadd.f32 1.0, %v1339_v13  ;;  %v1341_v5 = vpop.eup %1340 }
 0xeb4   :  { %1342 = vrcp.f32 %v767_v14 }
 0xec1   :  { %v1343_v15 = vpop.eup %1342 }
 0xec2   :  { %v770_v6 = vsel %vm1492_vm5, %v1341_v5, %v1343_v15 }
 0xec3   :  { %773 = vrot.lane.b32.xlu0 %v770_v6, %s1386_s3  ;;  %v771_v60 = vmul.f32 %v770_v6, %v680_v59 }
 0xf35   :  { %v774_v7 = vpop.permute.xlu0 %773 }
 0xf36   :  { %v776_v16 = vmul.f32 %v774_v7, %v770_v6 }
 0xf38   :  { %778 = vrot.lane.b32.xlu1 %v776_v16, %s1387_s11 }
 0xfaa   :  { %v779_v17 = vpop.permute.xlu1 %778 }
 0xfab   :  { %v781_v18 = vadd.f32 %v779_v17, %v771_v60 }
 0xfad   :  { %1344 = vtanh.f32 %v781_v18 }
 0xfba   :  { %v1345_v19 = vpop.eup %1344 }
 0xfbb   :  { %784 = vrot.lane.b32.xlu0 %v1345_v19, %s1386_s3 }
0x102d   :  { %v785_v21 = vpop.permute.xlu0 %784 }
0x102e   :  { %v787_v22 = vmul.f32 %v785_v21, %v770_v6 }
0x1030   :  { %789 = vrot.lane.b32.xlu1 %v787_v22, %s1387_s11 }
0x10a2   :  { %v790_v23 = vpop.permute.xlu1 %789 }
0x10a3   :  { %1269 = vmatmul.mubr.msk.f32.vlgmr.msra.gmra.mxu0 %vm183_vm6, %v790_v23 }
0x10a4   :  { %1290 = vmatprep.mubr.msk.f32.mxu0 %vm1385_vm2, %v1384_v2  ;;  %1283 = vmatpush3.msra.mxu0 %v993_v55 }
0x10a5   :  { %1284 = vmatprep.subr.mxu0 %v1384_v2 }
0x10a6   :  { %1285 = vmatpush3.msra.mxu0 %v992_v56 }
0x10a7   :  { %1286 = vmatprep.subr.mxu0 %v1384_v2 }
0x10a8   :  { %1287 = vmatpush3.msra.mxu0 %v991_v20 }
0x10a9   :  { %1288 = vmatprep.subr.mxu0 %v1384_v2 }
0x10aa   :  { %1289 = vmatpush3.msra.mxu0 %v990_v57 }
0x1163   :  { %v859_v25 = vpop.f32.mrf.mxu0 }
0x1164   :  { %v863_v26 = vadd.f32 %v859_v25, %v166_v24 }
0x1165   :  { %v1270_v27 = vpop.f32.mrf.mxu0 }
0x1166   :  { %v1121_v28 = vmul.f32 -1.442695, %v863_v26 }
0x1168   :  { %1346 = vpow2.f32 %v1121_v28 }
0x1169   :  { %1348 = vtanh.f32 %v863_v26 }
0x1175   :  { %v1347_v29 = vpop.eup %1346 }
0x1176   :  { %v868_v30 = vadd.f32 1.0, %v1347_v29  ;;  %v1349_v31 = vpop.eup %1348 }
0x1178   :  { %1350 = vrcp.f32 %v868_v30 }
0x1185   :  { %v1351_v32 = vpop.eup %1350 }
0x1186   :  { %v871_v33 = vsel %vm1492_vm5, %v1349_v31, %v1351_v32 }
0x1187   :  { %874 = vrot.lane.b32.xlu0 %v871_v33, %s1386_s3  ;;  %v872_v63 = vmul.f32 %v871_v33, %v781_v18 }
0x11f9   :  { %v875_v34 = vpop.permute.xlu0 %874 }
0x11fa   :  { %v877_v35 = vmul.f32 %v875_v34, %v871_v33 }
0x11fc   :  { %879 = vrot.lane.b32.xlu1 %v877_v35, %s1387_s11 }
0x126e   :  { %v880_v36 = vpop.permute.xlu1 %879 }
0x126f   :  { %v882_v37 = vadd.f32 %v880_v36, %v872_v63 }
0x1271   :  { %1352 = vtanh.f32 %v882_v37 }
0x127e   :  { %v1353_v38 = vpop.eup %1352 }
0x127f   :  { %885 = vrot.lane.b32.xlu0 %v1353_v38, %s1386_s3 }
0x12f1   :  { %v886_v39 = vpop.permute.xlu0 %885 }
0x12f2   :  { %v888_v40 = vmul.f32 %v886_v39, %v871_v33 }
0x12f4   :  { %890 = vrot.lane.b32.xlu1 %v888_v40, %s1387_s11 }
0x1366   :  { %v891_v41 = vpop.permute.xlu1 %890 }
0x1367   :  { %1280 = vmatmul.mubr.msk.f32.vlgmr.msra.gmra.mxu1 %vm183_vm6, %v891_v41 }
0x1427   :  { %v960_v43 = vpop.f32.mrf.mxu1 }
0x1428   :  { %v964_v44 = vadd.f32 %v960_v43, %v171_v42 }
0x1429   :  { %v1281_v45 = vpop.f32.mrf.mxu1 }
0x142a   :  { %v1123_v46 = vmul.f32 -1.442695, %v964_v44 }
0x142c   :  { %1354 = vpow2.f32 %v1123_v46 }
0x142d   :  { %1356 = vtanh.f32 %v964_v44 }
0x1439   :  { %v1355_v47 = vpop.eup %1354 }
0x143a   :  { %v969_v48 = vadd.f32 1.0, %v1355_v47  ;;  %v1357_v49 = vpop.eup %1356 }
0x143c   :  { %1358 = vrcp.f32 %v969_v48 }
0x1449   :  { %v1359_v50 = vpop.eup %1358 }
0x144a   :  { %v972_v51 = vsel %vm1492_vm5, %v1357_v49, %v1359_v50 }
0x144b   :  { %975 = vrot.lane.b32.xlu0 %v972_v51, %s1386_s3  ;;  %v973_v9 = vmul.f32 %v972_v51, %v882_v37 }
0x14bd   :  { %v976_v52 = vpop.permute.xlu0 %975 }
0x14be   :  { %v978_v53 = vmul.f32 %v976_v52, %v972_v51 }
0x14c0   :  { %980 = vrot.lane.b32.xlu1 %v978_v53, %s1387_s11 }
0x1532   :  { %v981_v62 = vpop.permute.xlu1 %980 }
0x1533   :  { %v983_v54 = vadd.f32 %v981_v62, %v973_v9 }
0x1535   :  { %1360 = vtanh.f32 %v983_v54 }
0x1542   :  { %v1361_v58 = vpop.eup %1360 }
0x1543   :  { %986 = vrot.lane.b32.xlu0 %v1361_v58, %s1386_s3 }
0x15b5   :  { %v987_v59 = vpop.permute.xlu0 %986 }
0x15b6   :  { %v989_v61 = vmul.f32 %v987_v59, %v972_v51 }
0x15b8   :  { %1002 = vrot.lane.b32.xlu1 %v989_v61, %s1387_s11 }
0x162a   :  { %v1003_v0 = vpop.permute.xlu1 %1002 }
0x162b   :  { %1291 = vmatmul.mubr.msk.f32.vlgmr.msra.gmra.mxu0 %vm183_vm6, %v1003_v0  ;;  %v1081_v2 = vsel %vm183_vm6, %v1003_v0, %v983_v54 }
0x16eb   :  { %v1072_v4 = vpop.f32.mrf.mxu0 }
0x16ec   :  { %v1073_v8 = vadd.f32 %v1124_v1, %v1072_v4 }
0x16ed   :  { %v1292_v10 = vpop.f32.mrf.mxu0 }
0x16ee   :  { %1078 = vrot.lane.b32.xlu0 %v1073_v8, %s1386_s3 }
0x1760   :  { %v1079_v3 = vpop.permute.xlu0 %1078 }
0x1761   :  { %v1083_v11 = vsel %vm1082_vm7, %v1081_v2, %v1079_v3 }
0x1762   :  { %1084 = vst [vmem:[#allocation2] sm:$0xff] %v1083_v11 }
0x1763   :  { %1373 = shalt.err (!%p1370_p4)
}
0x1764   :  { %1094 = dma.vmem_to_hbm [thread:$0]  %s1092_s8, 128, %s1677_s6, [#allocation3]  }
0x1765   :  { %1382 = dma.done.wait [#allocation3], 128  }
0x1766   :  { %1383 = vsyncadd [#allocation3], 4294967168 }
0x1767   :  { %1098 = vsyncpa [#allocation3], 1 }

</bundles_post_ra>
